<compile_context>
chip_gen: v6e
topology: v6e:2x2x1
jax: 0.10.0
libtpu: 0.0.40
codegen_flags: <defaults>
</compile_context>

<pallas_src>
import functools

import jax
import jax.numpy as jnp
from jax.experimental import pallas as pl
from jax.experimental.pallas import tpu as pltpu

EPS = 1e-5          # nn.InstanceNorm3d default eps
NEG_SLOPE = 0.01    # nn.LeakyReLU default negative_slope
_LANE = 128
_VMEM_LIMIT = 48 * 1024 * 1024   # under v7x's 64 MiB physical VMEM with ~25% headroom


def _conv_stats_kernel(x_ref, w_ref, conv_ref, stats_ref):
    """Per (batch, spatial-tile) step: one folded-K matmul + running IN statistics.

    x_ref    : (1, Ts, Kp)   bf16  im2col tile, 27 taps folded into the K axis
    w_ref    : (Cout, Kp)    bf16  conv weights (tap-major, Cin-minor K ordering)
    conv_ref : (1, Cout, Ts) f32   lane-dense conv output tile
    stats_ref: (1, Cout, 2)  f32   running [sum, sum_sq]; resident across the S axis
    """
    s = pl.program_id(1)

    # Single MXU matmul contracting over K = 27*Cin (zero-padded to a lane multiple).
    # Output is produced directly as (Cout, Ts) so the store is lane-dense.
    y = jnp.einsum("ck,sk->cs", w_ref[...], x_ref[0],
                   preferred_element_type=jnp.float32)            # (Cout, Ts) f32

    conv_ref[0] = y

    part = jnp.concatenate(
        [jnp.sum(y, axis=1, keepdims=True),
         jnp.sum(y * y, axis=1, keepdims=True)], axis=1)          # (Cout, 2)

    @pl.when(s == 0)
    def _init():
        stats_ref[...] = jnp.zeros_like(stats_ref)

    stats_ref[...] += part[None]


def _norm_lrelu_kernel(conv_ref, stats_ref, o_ref, *, inv_count):
    """InstanceNorm3d (affine=False, biased variance) + LeakyReLU on one conv tile."""
    y = conv_ref[0]                                       # (Cout, Ts) f32
    mean = stats_ref[0, :, 0:1] * inv_count               # (Cout, 1)
    var = stats_ref[0, :, 1:2] * inv_count - mean * mean  # biased variance
    inv_std = jax.lax.rsqrt(var + EPS)
    yn = (y - mean) * inv_std
    o_ref[0] = jnp.where(yn >= 0, yn, NEG_SLOPE * yn).astype(o_ref.dtype)


def _pick_s_tile(S, target=2048):
    """Largest divisor of S that is a multiple of 128 and <= target (lane-dense tiles)."""
    for t in range(min(S, target), 127, -1):
        if S % t == 0 and t % _LANE == 0:
            return t
    return S    # fall back to untiled; block == full dim is always a legal BlockSpec


def isensee_conv_block(x_ncdhw, weight_oidhw, *, stride=1, kernel_size=3,
                       s_tile=None, compute_dtype=jnp.bfloat16):
    """Forward pass of IsenseeConvolutionalBlock.

    x_ncdhw      : (N, Cin, D, H, W)
    weight_oidhw : (Cout, Cin, k, k, k) PyTorch Conv3d weight.
    """
    assert stride == 1, "module default stride=1 is what this kernel implements"
    N, Cin, D, H, W = x_ncdhw.shape
    Cout = weight_oidhw.shape[0]
    k = kernel_size
    pad = k // 2
    S = D * H * W
    K = k * k * k * Cin
    Kp = ((K + _LANE - 1) // _LANE) * _LANE   # pad contraction axis to a lane multiple

    if s_tile is None:
        s_tile = _pick_s_tile(S)
    assert S % s_tile == 0 and (s_tile % _LANE == 0 or s_tile == S)
    num_s = S // s_tile

    # ---- glue (plain JAX): folded im2col --------------------------------------
    # One concatenate producing (N, S, 27*Cin): the 27 stencil taps live on the
    # matmul contraction axis, so the kernel runs a single K=27*Cin matmul per tile.
    x = jnp.transpose(x_ncdhw, (0, 2, 3, 4, 1))                    # NDHWC
    xp = jnp.pad(x, ((0, 0), (pad, pad), (pad, pad), (pad, pad), (0, 0)))
    taps = [xp[:, kd:kd + D, kh:kh + H, kw:kw + W, :]
            for kd in range(k) for kh in range(k) for kw in range(k)]
    x_cols = jnp.concatenate(taps, axis=-1).reshape(N, S, K)
    x_cols = jnp.pad(x_cols, ((0, 0), (0, 0), (0, Kp - K))).astype(compute_dtype)
    # TODO(synk): for production-sized volumes, generate the taps inside the kernel
    # from the padded NDHWC tensor (halo DMA per depth slab) instead of materializing
    # the 27x im2col in HBM.

    # PyTorch (Cout, Cin, kd, kh, kw) -> (Cout, kd, kh, kw, Cin) -> (Cout, 27*Cin);
    # matches the tap-major / Cin-minor K ordering of x_cols.
    w2 = jnp.transpose(weight_oidhw, (0, 2, 3, 4, 1)).reshape(Cout, K)
    w2 = jnp.pad(w2, ((0, 0), (0, Kp - K))).astype(compute_dtype)

    # ---- pass 1: conv (single folded matmul) + cross-tile IN statistics --------
    # TODO(synk): for N == 1 on v7x (2 TensorCores), split S into a leading "parallel"
    # axis with per-chunk partial stats combined in pass 2 so both cores get work.
    conv_f32, stats = pl.pallas_call(
        _conv_stats_kernel,
        out_shape=(
            jax.ShapeDtypeStruct((N, Cout, S), jnp.float32),
            jax.ShapeDtypeStruct((N, Cout, 2), jnp.float32),
        ),
        grid_spec=pltpu.PrefetchScalarGridSpec(
            num_scalar_prefetch=0,
            grid=(N, num_s),
            in_specs=[
                pl.BlockSpec((1, s_tile, Kp), lambda n, s: (n, s, 0)),
                pl.BlockSpec((Cout, Kp), lambda n, s: (0, 0)),
            ],
            out_specs=[
                pl.BlockSpec((1, Cout, s_tile), lambda n, s: (n, 0, s)),
                pl.BlockSpec((1, Cout, 2), lambda n, s: (n, 0, 0)),
            ],
        ),
        compiler_params=pltpu.CompilerParams(
            dimension_semantics=("parallel", "arbitrary"),
            vmem_limit_bytes=_VMEM_LIMIT),
    )(x_cols, w2)

    # ---- pass 2: normalize with the global per-sample stats + LeakyReLU --------
    norm_kernel = functools.partial(_norm_lrelu_kernel, inv_count=1.0 / S)
    out_flat = pl.pallas_call(
        norm_kernel,
        out_shape=jax.ShapeDtypeStruct((N, Cout, S), x_ncdhw.dtype),
        grid_spec=pltpu.PrefetchScalarGridSpec(
            num_scalar_prefetch=0,
            grid=(N, num_s),
            in_specs=[
                pl.BlockSpec((1, Cout, s_tile), lambda n, s: (n, 0, s)),
                pl.BlockSpec((1, Cout, 2), lambda n, s: (n, 0, 0)),
            ],
            out_specs=pl.BlockSpec((1, Cout, s_tile), lambda n, s: (n, 0, s)),
        ),
        compiler_params=pltpu.CompilerParams(
            dimension_semantics=("parallel", "parallel"),
            vmem_limit_bytes=_VMEM_LIMIT),
    )(conv_f32, stats)

    # (N, Cout, S) reshapes straight back to NCDHW -- no output transpose needed.
    return out_flat.reshape(N, Cout, D, H, W)


def _reference(x_ncdhw, weight):
    conv = jax.lax.conv_general_dilated(
        x_ncdhw, weight, window_strides=(1, 1, 1),
        padding=((1, 1), (1, 1), (1, 1)),
        dimension_numbers=("NCDHW", "OIDHW", "NCDHW"),
        precision=jax.lax.Precision.HIGHEST)
    mean = conv.mean(axis=(2, 3, 4), keepdims=True)
    var = ((conv - mean) ** 2).mean(axis=(2, 3, 4), keepdims=True)
    y = (conv - mean) / jnp.sqrt(var + EPS)
    return jnp.where(y >= 0, y, NEG_SLOPE * y)


if __name__ == "__main__":
    key = jax.random.PRNGKey(0)
    kx, kw = jax.random.split(key)
    N, Cin, Cout, D, H, W = 2, 4, 8, 8, 8, 8
    x = jax.random.normal(kx, (N, Cin, D, H, W), dtype=jnp.float32)
    # Conv3d(in_planes=4, planes=8, kernel_size=3, stride=1, padding=1) weight
    weight = jax.random.normal(kw, (Cout, Cin, 3, 3, 3), dtype=jnp.float32) * 0.1
    # TODO(synk): a conv bias (if conv3x3x3 used bias=True) is omitted; it is exactly
    # cancelled by the affine-free InstanceNorm3d that follows, so output is identical.

    # s_tile=128 -> 4 spatial tiles per sample, exercising the cross-tile
    # InstanceNorm sum / sum-of-squares accumulation path.
    out = jax.block_until_ready(isensee_conv_block(x, weight, s_tile=128))
    ref = _reference(x, weight)

    assert out.shape == (N, Cout, D, H, W), out.shape
    # Tolerance loosened slightly vs the f32 reference because the conv matmul uses
    # bf16 operands with f32 accumulation (bf16 MXU path).
    assert jnp.allclose(out, ref, atol=5e-2, rtol=5e-2), float(
        jnp.max(jnp.abs(out - ref)))
    print("KERNEL_OK")
</pallas_src>

<mosaic_0001>
module attributes {stable_mosaic.version = 11 : i64} {
  func.func @_conv_stats_kernel(%arg0: i32, %arg1: i32, %arg2: memref<1x128x128xbf16, #tpu.memory_space<vmem>>, %arg3: memref<8x128xbf16, #tpu.memory_space<vmem>>, %arg4: memref<1x8x128xf32, #tpu.memory_space<vmem>>, %arg5: memref<1x8x2xf32, #tpu.memory_space<vmem>>) attributes {dimension_semantics = [#tpu.dimension_semantics<parallel>, #tpu.dimension_semantics<arbitrary>], iteration_bounds = array<i64: 2, 4>, scalar_prefetch = 0 : i64, scratch_operands = 0 : i64, tpu.core_type = #tpu.core_type<tc>, window_params = [{transform_indices = @transform_0, window_bounds = array<i64: 1, 128, 128>}, {pipeline_mode = #tpu.pipeline_mode<synchronous>, transform_indices = @transform_1, window_bounds = array<i64: 8, 128>}, {transform_indices = @transform_2, window_bounds = array<i64: 1, 8, 128>}, {transform_indices = @transform_3, window_bounds = array<i64: 1, 8, 2>}]} {
    %c0 = arith.constant 0 : index
    %c0_0 = arith.constant 0 : index
    %0 = vector.load %arg3[%c0, %c0_0] : memref<8x128xbf16, #tpu.memory_space<vmem>>, vector<8x128xbf16>
    %c0_1 = arith.constant 0 : index
    %c0_2 = arith.constant 0 : index
    %c0_3 = arith.constant 0 : index
    %1 = vector.load %arg2[%c0_1, %c0_2, %c0_3] : memref<1x128x128xbf16, #tpu.memory_space<vmem>>, vector<1x128x128xbf16>
    %2 = vector.shape_cast %1 : vector<1x128x128xbf16> to vector<128x128xbf16>
    "tpu.trace_start"() <{level = 10 : i32, message = "ck,sk->cs"}> : () -> ()
    %cst = arith.constant dense<0.000000e+00> : vector<8x128xf32>
    %3 = tpu.matmul %0, %2, %cst {dimension_numbers = #tpu.dot_dimension_numbers<[1], [1], [0], [0], [0, 0, 1, 0], [], []>} : vector<8x128xbf16>, vector<128x128xbf16>, vector<8x128xf32> -> vector<8x128xf32>
    "tpu.trace_stop"() : () -> ()
    %c0_4 = arith.constant 0 : index
    %c0_5 = arith.constant 0 : index
    %c0_6 = arith.constant 0 : index
    %4 = vector.load %arg4[%c0_4, %c0_5, %c0_6] : memref<1x8x128xf32, #tpu.memory_space<vmem>>, vector<1x8x128xf32>
    %5 = vector.shape_cast %4 : vector<1x8x128xf32> to vector<8x128xf32>
    %6 = vector.shape_cast %3 : vector<8x128xf32> to vector<1x8x128xf32>
    tpu.vector_store %arg4[%c0_4, %c0_5, %c0_6], %6 {strides = array<i32>} : memref<1x8x128xf32, #tpu.memory_space<vmem>>, vector<1x8x128xf32>,
    %cst_7 = arith.constant dense<0.000000e+00> : vector<8xf32>
    %7 = vector.multi_reduction <add>, %3, %cst_7 [1] : vector<8x128xf32> to vector<8xf32>
    %8 = vector.shape_cast %7 : vector<8xf32> to vector<8x1xf32>
    %9 = arith.mulf %3, %3 : vector<8x128xf32>
    %cst_8 = arith.constant dense<0.000000e+00> : vector<8xf32>
    %10 = vector.multi_reduction <add>, %9, %cst_8 [1] : vector<8x128xf32> to vector<8xf32>
    %11 = vector.shape_cast %10 : vector<8xf32> to vector<8x1xf32>
    %12 = tpu.concatenate %8, %11 in 1 : vector<8x1xf32>, vector<8x1xf32> -> vector<8x2xf32>
    %c0_i32 = arith.constant 0 : i32
    %13 = arith.cmpi eq, %arg1, %c0_i32 : i32
    %14 = arith.extui %13 : i1 to i32
    %c0_i32_9 = arith.constant 0 : i32
    %15 = arith.cmpi ne, %14, %c0_i32_9 : i32
    scf.if %15 {
      %cst_16 = arith.constant 0.000000e+00 : f32
      %20 = vector.broadcast %cst_16 : f32 to vector<1x8x2xf32>
      %c0_17 = arith.constant 0 : index
      %c0_18 = arith.constant 0 : index
      %c0_19 = arith.constant 0 : index
      %21 = vector.load %arg5[%c0_17, %c0_18, %c0_19] : memref<1x8x2xf32, #tpu.memory_space<vmem>>, vector<1x8x2xf32>
      tpu.vector_store %arg5[%c0_17, %c0_18, %c0_19], %20 {strides = array<i32>} : memref<1x8x2xf32, #tpu.memory_space<vmem>>, vector<1x8x2xf32>,
    } else {
    }
    %c0_10 = arith.constant 0 : index
    %c0_11 = arith.constant 0 : index
    %c0_12 = arith.constant 0 : index
    %16 = vector.load %arg5[%c0_10, %c0_11, %c0_12] : memref<1x8x2xf32, #tpu.memory_space<vmem>>, vector<1x8x2xf32>
    %17 = vector.shape_cast %12 : vector<8x2xf32> to vector<1x8x2xf32>
    %18 = arith.addf %16, %17 : vector<1x8x2xf32>
    %c0_13 = arith.constant 0 : index
    %c0_14 = arith.constant 0 : index
    %c0_15 = arith.constant 0 : index
    %19 = vector.load %arg5[%c0_13, %c0_14, %c0_15] : memref<1x8x2xf32, #tpu.memory_space<vmem>>, vector<1x8x2xf32>
    tpu.vector_store %arg5[%c0_13, %c0_14, %c0_15], %18 {strides = array<i32>} : memref<1x8x2xf32, #tpu.memory_space<vmem>>, vector<1x8x2xf32>,
    return
  }
  func.func @transform_0(%arg0: i32, %arg1: i32) -> (i32, i32, i32) {
    %c0_i32 = arith.constant 0 : i32
    %c0_i32_0 = arith.constant 0 : i32
    return %arg0, %arg1, %c0_i32 : i32, i32, i32
  }
  func.func @transform_1(%arg0: i32, %arg1: i32) -> (i32, i32) {
    %c0_i32 = arith.constant 0 : i32
    %c0_i32_0 = arith.constant 0 : i32
    %c0_i32_1 = arith.constant 0 : i32
    return %c0_i32, %c0_i32_0 : i32, i32
  }
  func.func @transform_2(%arg0: i32, %arg1: i32) -> (i32, i32, i32) {
    %c0_i32 = arith.constant 0 : i32
    %c0_i32_0 = arith.constant 0 : i32
    return %arg0, %c0_i32, %arg1 : i32, i32, i32
  }
  func.func @transform_3(%arg0: i32, %arg1: i32) -> (i32, i32, i32) {
    %c0_i32 = arith.constant 0 : i32
    %c0_i32_0 = arith.constant 0 : i32
    %c0_i32_1 = arith.constant 0 : i32
    return %arg0, %c0_i32, %c0_i32_0 : i32, i32, i32
  }
}

</mosaic_0001>

<bundles_post_ra>
// kernel: tpu_custom_call.1
= control target key start
LH: loop header
LB: loop body
LE: loop exit
PB: predicated region body
PF: predicated region fallthrough
CT: control target
= control target key end

     0   :  { %s1041_s0 = inlined_call_operand.hbm [shape: bf16[2,512,128], index: 0, kind: input, shape index: {}]   ;;  %s1042_s1 = inlined_call_operand.hbm [shape: bf16[8,128], index: 1, kind: input, shape index: {}]   ;;  %s1043_s2 = inlined_call_operand.hbm [shape: f32[2,8,512], index: 2, kind: output, shape index: {0}]   ;;  %s1044_s3 = inlined_call_operand.vmem [shape: f32[2,8,2], index: 3, kind: output, shape index: {1}]  }
   0x1   :  { %1055 = sst [smem:[#allocation16_spill]] %s1042_s1 }
   0x2   :  { %1056 = sst [smem:[#allocation17_spill]] %s1043_s2 }
   0x3   :  { %9 = vsyncpa [#allocation3], 0 }
   0x4   :  { %11 = vsyncpa [#allocation3 + $0x1], 0 }
   0x5   :  { %12 = vsyncpa [#allocation6], 0 }
   0x6   :  { %13 = vsyncpa [#allocation4], 0 }
   0x7   :  { %15 = vsyncpa [#allocation4 + $0x1], 0  ;;  %s842_s12 = smov 0   ;;  %s844_s13 = smov 0  }
   0x8   :  { %s846_s14 = smov 0   ;;  %s848_s15 = smov 0  }
   0x9   :  { %s850_s16 = smov 0   ;;  %s852_s17 = smov 0  }
   0xa   :  { %s854_s18 = smov 0   ;;  %s856_s19 = smov 0  }
   0xb LB: > { %1057 = sst [smem:[#allocation11_spill]] %s784_s12  ;;  %s499_s20 = sadd.s32 4294967295, %s812_s19   ;;  %s812_s19 = sphi %s856_s19, %s21_s19   ;;  %s808_s18 = sphi %s854_s18, %s1086_s18   ;;  %s804_s17 = sphi %s852_s17, %s1085_s17   ;;  %s800_s16 = sphi %s850_s16, %s1084_s16   ;;  %s796_s15 = sphi %s848_s15, %s1079_s15   ;;  %s792_s14 = sphi %s846_s14, %s1083_s14   ;;  %s788_s13 = sphi %s844_s13, %s1082_s13   ;;  %s784_s12 = sphi %s842_s12, %s1081_s12  }
   0xc   : > { %1058 = sst [smem:[#allocation12_spill]] %s804_s17  ;;  %s500_s21 = sadd.s32 4294967294, %s812_s19  }
   0xd   : > { %1059 = sst [smem:[#allocation13_spill]] %s812_s19  ;;  %p49_p0 = scmp.ne.s32.totalorder %s792_s14, %s788_s13 }
   0xe   : > { %p50_p1 = scmp.eq.s32.totalorder %s812_s19, 0  ;;  %p55_p2 = scmp.ne.s32.totalorder %s788_s13, %s784_s12 }
   0xf   : > { %p890_p3 = scmp.eq.s32.totalorder %s499_s20, 0  ;;  %p102_p4 = scmp.eq.s32.totalorder %s499_s20, 7 }
  0x10   : > { %p894_p5 = por %p50_p1, %p49_p0  ;;  %p108_p6 = scmp.eq.s32.totalorder %s500_s21, 7 }
  0x11   : > { %p900_p7 = por %p890_p3, %p55_p2  ;;  %p904_p8 = por %p102_p4, %p49_p0 }
  0x12   : > { %p908_p9 = por %p108_p6, %p55_p2  ;;  %p501_p10 = scmp.ge.s32.totalorder %s812_s19, 1 }
  0x13   : > { %s1062_s25 = scalar_select %p900_p7, 1, 0 }
  0x14   : > { %s1063_s26 = scalar_select %p904_p8, 1, 0 }
  0x15   : > { %s1064_s27 = scalar_select %p908_p9, 1, 0 }
  0x16   : > { %p141_p11 = scmp.lt.s32.totalorder %s812_s19, 9  ;;  %s814_s29 = smov [#allocation5]  }
  0x17   : > { %1065 = sst [smem:[#allocation14_spill]] %s1064_s27  ;;  %s154_s30 = sshll.u32 %s814_s29, 4  ;;  %s155_s30 = int_to_ptr.vmem [resolvable:$true] %s154_s30 }
  0x18   : > { %p914_p12 = pnand %p501_p10, %p141_p11  ;;  %p577_p13 = scmp.lt.s32.totalorder %s812_s19, 8 }
  0x19   : > { %s30_s5 = sadd.s32 1, %s804_s17  ;;  %s669_s6 = scalar_lea.vmem %s155_s30, 64 }
  0x1a   : > { %s1066_s28 = scalar_select %p914_p12, 1, 0 }
  0x1b   : > { %p564_p0 = pneg %p914_p12  ;;  %p923_p1 = pnand %p577_p13, %p894_p5 }
  0x1c   : > { %p670_p6 = scmp.ne.s32.totalorder %s155_s30, %s669_s6  ;;  %p677_p9 = scmp.lt.s32.totalorder %s155_s30, %s155_s30 }
  0x1d   : > { %p565_p2 = pnand %p564_p0, %p890_p3  ;;  %p678_p8 = scmp.lt.s32.totalorder %s669_s6, %s669_s6 }
  0x1f   : > { %p660_p4 = pneg %p565_p2  ;;  %p679_p7 = por %p678_p8, %p677_p9 }
  0x21   : > { %p672_p10 = pnand %p670_p6, %p660_p4 }
  0x23   : > { %p673_p11 = pneg %p672_p10 }
  0x25   : > { %p680_p12 = pnand %p679_p7, %p673_p11 }
  0x27   : > { %683 = shalt.err (!%p680_p12)
}
  0x28   : > { %s1068_s1 = sld [smem:[#allocation16_spill]]  ;;  %p31_p5 = scmp.ge.s32.totalorder %s30_s5, 4 }
  0x29   : > { %s33_s9 = sadd.s32 1, %s808_s18  ;;  %s165_s10 = sand.u32 1, %s792_s14  }
  0x2a   : > { %s505_s11 = sshll.u32 %s804_s17, 4  ;;  %s1088_s5 = smov (%p31_p5, %s30_s5), 0 }
  0x2b   : > { %1069 = sst [smem:[#allocation15_spill]] %s1088_s5  ;;  %s1090_s9 = smov (!%p31_p5, %s33_s9), %s808_s18 }
  0x2c   : > { %s38_s20 = ssub.s32 %s804_s17, %s1088_s5  ;;  %p35_p7 = scmp.ge.s32.totalorder %s1090_s9, 2 }
  0x2d   : > { %s504_s21 = sshll.u32 %s165_s10, 6  ;;  %s506_s24 = sshll.u32 %s808_s18, 6 }
  0x2e   : > { %567 = dma.hbm_to_vmem [thread:$0]  (!%p565_p2), %s1068_s1, 64, %s155_s30, [#allocation6]  }
  0x2f   : > { %s1092_s9 = smov (%p35_p7, %s1090_s9), 0  ;;  %s175_s29 = sadd.s32 %s506_s24, %s505_s11 }
  0x30   : > { %s169_s30 = scalar_lea.vmem [#allocation2], %s504_s21  ;;  %s37_s7 = ssub.s32 %s808_s18, %s1092_s9 }
  0x31   : > { %s178_s6 = sshll.u32 %s169_s30, 4  ;;  %s507_s8 = sshll.u32 %s175_s29, 6  ;;  %s179_s6 = int_to_ptr.vmem [resolvable:$true] %s178_s6 }
  0x32   : > { %s39_s22 = sor.u32 %s38_s20, %s37_s7  ;;  %s177_s12 = scalar_lea.hbm %s1041_s0, %s507_s8 }
  0x33   : > { %p40_p8 = scmp.eq.s32.totalorder %s39_s22, 0  ;;  %s1070_s5 = sadd.s32 1, %s792_s14 }
  0x34   : > { %s166_s19 = scalar_lea.sflag [#allocation3], %s165_s10  ;;  %p686_p9 = pneg %p923_p1 }
  0x35   : > { %s952_s17 = scalar_select %p40_p8, %s792_s14, %s1070_s5  }
  0x36   : > { %s697_s2 = scalar_lea.vmem %s179_s6, 1024  ;;  %s815_s11 = smov [#allocation2]  }
  0x37   : > { %p698_p12 = scmp.ne.s32.totalorder %s179_s6, %s697_s2  ;;  %s702_s21 = sshll.u32 %s815_s11, 4  ;;  %s703_s21 = int_to_ptr.vmem [resolvable:$false] %s702_s21 }
  0x38   : > { %s704_s20 = scalar_lea.vmem %s703_s21, 2048  ;;  %p705_p2 = scmp.lt.s32.totalorder %s179_s6, %s703_s21 }
  0x39   : > { %p700_p13 = pnand %p698_p12, %p686_p9  ;;  %p706_p4 = scmp.lt.s32.totalorder %s704_s20, %s697_s2 }
  0x3b   : > { %p701_p0 = pneg %p700_p13  ;;  %p707_p6 = por %p706_p4, %p705_p2 }
  0x3d   : > { %p708_p10 = pnand %p707_p6, %p701_p0 }
  0x3f   : > { %711 = shalt.err (!%p708_p10)
}
  0x40   : > { %s816_s1 = smov 64   ;;  %s817_s22 = smov 4  }
  0x41   : > { %571 = dma.hbm_to_vmem [thread:$0]  (!%p923_p1), %s177_s12, 1024, %s179_s6, %s166_s19, %s816_s1, %s816_s1, %s817_s22  }
  0x42   : > { %p1071_p11 = scmp.ne.s32.totalorder %s1066_s28, 0 }
  0x43   : > { %s961_s27 = sand.u32 (!%p1071_p11), 1, %s788_s13   ;;  %p1072_p5 = scmp.ne.s32.totalorder (!%p1071_p11), %s1062_s25, 0 }
  0x44   : > { %190 = sbr.rel (%p1071_p11) target bundleno = 505 (0x1f9), region = 28  ;;  %s509_s5 = sshll.u32 (!%p1071_p11), %s961_s27, 6 }
  0x45   : > { %s193_s10 = scalar_lea.sflag (!%p1071_p11), [#allocation3], %s961_s27  ;;  %s965_s2 = scalar_lea.vmem (!%p1071_p11), [#allocation2], %s509_s5 }
  0x49   : > { %771 = dma.done.wait (%p1072_p5), %s193_s10, 1024  }
  0x4a   : > { %773 = vsyncadd (%p1072_p5), %s193_s10, 4294966272 }
  0x4b   : > { %775 = dma.done.wait (%p890_p3), [#allocation6], 64  }
  0x4c   : > { %777 = vsyncadd (%p890_p3), [#allocation6], 4294967232  ;;  %p228_p1 = scmp.lt.s32.totalorder %s800_s16, 1  ;;  %v818_v0 = vmov 0.0   ;;  %vm819_vm0 = vmmov 0   ;;  %v650_v1 = vld [vmem:[%s965_s2 + $0x38] sm:$0xff]  }
  0x4d   : > { %536 = vmatprep.subr.bf16.mxu0 %v818_v0  ;;  %552 = vmatprep.mubr.msk.bf16.mxu0 %vm819_vm0, %v818_v0  ;;  %v651_v2 = vld [vmem:[%s965_s2 + $0x30] sm:$0xff]   ;;  %v652_v3 = vld [vmem:[%s965_s2 + $0x28] sm:$0xff]   ;;  %v653_v4 = vld [vmem:[%s965_s2 + $0x20] sm:$0xff]   ;;  %s511_s23 = sshll.u32 %s961_s27, 3  ;;  %vm344_vm1 = vcmask 7168   ;;  %p521_p3 = scmp.ne.s32.totalorder %s796_s15, 0 }
  0x4e   : > { %s229_s12 = scalar_select %p228_p1, %s800_s16, 1  ;;  %537 = vmatpush3.bf16.xpose.msra.mxu0 %v650_v1  ;;  %v654_v5 = vld [vmem:[%s965_s2 + $0x18] sm:$0xff]   ;;  %v655_v6 = vld [vmem:[%s965_s2 + $0x10] sm:$0xff]   ;;  %v656_v7 = vld [vmem:[%s965_s2 + $0x8] sm:$0xff]  }
  0x4f   : > { %538 = vmatprep.subr.bf16.mxu0 %v818_v0  ;;  %v657_v8 = vld [vmem:[%s965_s2] sm:$0xff]   ;;  %s220_s24 = scalar_lea.vmem [#allocation7], %s511_s23 }
  0x50   : > { %s512_s19 = sshll.u32 %s229_s12, 3  ;;  %v233_v9 = vld [vmem:[#allocation5] sm:$0xf] }
  0x51   : > { %s980_s4 = scalar_lea.vmem %s1044_s3, %s512_s19 }
  0x56   : > { %539 = vmatpush3.bf16.xpose.msra.mxu0 %v651_v2 }
  0x57   : > { %540 = vmatprep.subr.bf16.mxu0 %v818_v0 }
  0x5e   : > { %541 = vmatpush3.bf16.xpose.msra.mxu0 %v652_v3 }
  0x5f   : > { %542 = vmatprep.subr.bf16.mxu0 %v818_v0 }
  0x66   : > { %543 = vmatpush3.bf16.xpose.msra.mxu0 %v653_v4 }
  0x67   : > { %544 = vmatprep.subr.bf16.mxu0 %v818_v0 }
  0x6e   : > { %545 = vmatpush3.bf16.xpose.msra.mxu0 %v654_v5 }
  0x6f   : > { %546 = vmatprep.subr.bf16.mxu0 %v818_v0 }
  0x76   : > { %547 = vmatpush3.bf16.xpose.msra.mxu0 %v655_v6 }
  0x77   : > { %548 = vmatprep.subr.bf16.mxu0 %v818_v0 }
  0x7e   : > { %549 = vmatpush3.bf16.xpose.msra.mxu0 %v656_v7 }
  0x7f   : > { %550 = vmatprep.subr.bf16.mxu0 %v818_v0 }
  0x86   : > { %551 = vmatpush3.bf16.xpose.msra.mxu0 %v657_v8 }
  0x8d   : > { %553 = vmatmul.mubr.bf16.vlgmr.msra.gmra.mxu0 %v233_v9 }
 0x14d   : > { %v332_v10 = vpop.f32.mrf.mxu0 }
 0x14e   : > { %338 = vst [vmem:[%s220_s24] sm:$0xff] %v332_v10  ;;  %339 = vadd.xlane.f32.xlu0 %v332_v10  ;;  %v341_v12 = vmul.f32 %v332_v10, %v332_v10 }
 0x14f   : > { %v554_v11 = vpop.f32.mrf.mxu0 }
 0x151   : > { %v335_v13 = vpop.f32.mrf.mxu0 }
 0x152   : > { %342 = vadd.xlane.f32.xlu0 %v341_v12 }
 0x153   : > { %v555_v14 = vpop.f32.mrf.mxu0 }
 0x1d7   : > { %v340_v15 = vpop.xlane.xlu0 %339 }
 0x1d8   : > { %349 = sbr.rel (%p521_p3) target bundleno = 479 (0x1df), region = 40 }
 0x1db   : > { %v343_v16 = vpop.xlane.xlu0 %342 }
 0x1dc   : > { %v345_v17 = vsel %vm344_vm1, %v340_v15, %v343_v16 }
 0x1dd   : > { %vm350_vm2 = vcmask 15360   ;;  %v820_v18 = vmov 0.0  }
 0x1de   : > { %351 = vst.msk [vmem:[%s980_s4] sm:$0xff] %vm350_vm2, %v820_v18 }
 0x1df PF: > { %vm354_vm3 = vcmask 15360   ;;  %s523_s29 = sshll.u32 %s800_s16, 2  ;;  %s376_s6 = sshll.u32 %s220_s24, 4  ;;  %s377_s6 = int_to_ptr.vmem [resolvable:$true] %s376_s6 }
 0x1e0   : > { %s372_s30 = sadd.s32 %s796_s15, %s523_s29  ;;  %s1073_s21 = sld [smem:[#allocation17_spill]] }
 0x1e1   : > { %s524_s7 = sshll.u32 %s372_s30, 7  ;;  %s357_s1 = scalar_lea.sflag [#allocation4], %s961_s27 }
 0x1e2   : > { %s712_s22 = scalar_lea.vmem %s377_s6, 128  ;;  %p1074_p8 = scmp.ne.s32.totalorder %s1063_s26, 0 }
 0x1e3   : > { %p713_p7 = scmp.ne.s32.totalorder %s377_s6, %s712_s22  ;;  %s821_s5 = smov [#allocation7]  }
 0x1e4   : > { %s716_s10 = sshll.u32 %s821_s5, 4  ;;  %s717_s10 = int_to_ptr.vmem [resolvable:$false] %s716_s10 }
 0x1e5   : > { %v352_v19 = vld [vmem:[%s980_s4] sm:$0xff]  ;;  %p714_p9 = pnand %p713_p7, %p1074_p8  ;;  %s718_s16 = scalar_lea.vmem %s717_s10, 256 }
 0x1e6   : > { %v353_v20 = vadd.f32 %v352_v19, %v345_v17  ;;  %s374_s20 = scalar_lea.hbm %s1073_s21, %s524_s7  ;;  %p719_p13 = scmp.lt.s32.totalorder %s377_s6, %s717_s10 }
 0x1e7   : > { %p715_p12 = pneg %p714_p9  ;;  %p720_p0 = scmp.lt.s32.totalorder %s718_s16, %s712_s22 }
 0x1e8   : > { %355 = vst.msk [vmem:[%s980_s4] sm:$0xff] %vm354_vm3, %v353_v20 }
 0x1e9   : > { %p721_p2 = por %p720_p0, %p719_p13 }
 0x1eb   : > { %p722_p4 = pnand %p721_p2, %p715_p12 }
 0x1ed   : > { %725 = shalt.err (!%p722_p4)
}
 0x1ee   : > { %s726_s15 = scalar_lea.hbm %s374_s20, 128  ;;  %s730_s12 = scalar_lea.hbm %s1073_s21, 1024 }
 0x1ef   : > { %p727_p6 = scmp.ne.s32.totalorder %s374_s20, %s726_s15  ;;  %p731_p5 = scmp.lt.s32.totalorder %s374_s20, %s1073_s21 }
 0x1f0   : > { %p732_p1 = scmp.lt.s32.totalorder %s730_s12, %s726_s15 }
 0x1f1   : > { %p728_p10 = pnand %p727_p6, %p1074_p8 }
 0x1f2   : > { %p733_p3 = por %p732_p1, %p731_p5 }
 0x1f3   : > { %p729_p11 = pneg %p728_p10 }
 0x1f5   : > { %p734_p7 = pnand %p733_p3, %p729_p11 }
 0x1f7   : > { %737 = shalt.err (!%p734_p7)
}
 0x1f8   : > { %562 = dma.vmem_to_hbm [thread:$0]  (%p1074_p8), %s377_s6, 128, %s374_s20, %s357_s1  }
 0x1f9 PF: > { %s1075_s28 = sld [smem:[#allocation13_spill]] }
 0x1fa   : > { %s1076_s4 = sld [smem:[#allocation11_spill]] }
 0x1fb   : > { %s1077_s23 = sld [smem:[#allocation14_spill]] }
 0x1ff   : > { %p579_p9 = scmp.ge.s32.totalorder %s1075_s28, 2 }
 0x200   : > { %s391_s24 = sand.u32 1, %s1076_s4  }
 0x201   : > { %p1078_p12 = scmp.ne.s32.totalorder %s1077_s23, 0  ;;  %s392_s29 = scalar_lea.sflag [#allocation4], %s391_s24 }
 0x203   : > { %p573_p13 = pnand %p579_p9, %p1078_p12 }
 0x205   : > { %p574_p0 = pneg %p573_p13 }
 0x207   : > { %779 = dma.done.wait (%p574_p0), %s392_s29, 128  }
 0x208   : > { %781 = vsyncadd (%p574_p0), %s392_s29, 4294967168  ;;  %s21_s19 = sadd.s32 1, %s1075_s28   ;;  %s1079_s15 = sld [smem:[#allocation12_spill]] }
 0x209   : > { %p18_p2 = scmp.ge.s32.totalorder %s21_s19, 10   ;;  %s1080_s26 = sld [smem:[#allocation15_spill]] }
 0x20a   : > { %s1081_s12 = smov %s788_s13  ;;  %s1082_s13 = smov %s792_s14 }
 0x20b   : > { %s1083_s14 = smov %s952_s17  ;;  %s1084_s16 = smov %s808_s18 }
 0x20c   : > { %s1086_s18 = smov %s1092_s9  ;;  %20 = sbr.rel (!%p18_p2) target bundleno = 11 (0xb), region = 93 }
 0x20f   : > { %s1085_s17 = smov %s1080_s26 }
 0x211   :  { %404 = vsyncpa [#allocation3], 1 }
 0x212   :  { %406 = vsyncpa [#allocation3 + $0x1], 1 }
 0x213   :  { %407 = vsyncpa [#allocation6], 1 }
 0x214   :  { %408 = vsyncpa [#allocation4], 1 }
 0x215   :  { %410 = vsyncpa [#allocation4 + $0x1], 1 }

</bundles_post_ra>
